<compile_context>
chip_gen: v5e
topology: v5e:2x2
jax: 0.10.0
libtpu: 0.0.40
codegen_flags: <defaults>
</compile_context>

<pallas_src>
import functools

import jax
import jax.numpy as jnp
from jax.experimental import pallas as pl
from jax.experimental.pallas import tpu as pltpu

LN_EPS = 1e-12


def _bert_output_kernel(x_ref, res_ref, w_ref, b_ref, g_ref, beta_ref, o_ref):
    # Dense: contract x's hidden_in axis with weight's last axis
    # (weight stays in PyTorch [H_out, H_in] layout -> no wrapper transpose).
    # Operands are fed to the MXU in their native dtype (bf16 or f32);
    # accumulation is forced to f32 via preferred_element_type.
    y = jax.lax.dot_general(
        x_ref[...], w_ref[...],
        dimension_numbers=(((1,), (1,)), ((), ())),
        preferred_element_type=jnp.float32,
    )
    y = y + b_ref[...].astype(jnp.float32)

    # Dropout: module is evaluated in inference mode -> identity.
    # TODO(synk): training-mode dropout (stochastic masking via pltpu.prng_*) not implemented.

    # Residual add + LayerNorm over the hidden axis, all in f32
    # (biased variance, eps inside rsqrt -> matches BertLayerNorm).
    y = y + res_ref[...].astype(jnp.float32)
    u = jnp.mean(y, axis=-1, keepdims=True)
    d = y - u
    s = jnp.mean(d * d, axis=-1, keepdims=True)
    normed = d * jax.lax.rsqrt(s + LN_EPS)
    out = g_ref[...].astype(jnp.float32) * normed + beta_ref[...].astype(jnp.float32)
    o_ref[...] = out.astype(o_ref.dtype)


def _round_up(x, m):
    return ((x + m - 1) // m) * m


def _pick_row_tile(m, sublane):
    """Largest tile from a 128/256/512 ladder with <=25% row padding."""
    for t in (512, 256, 128, 64, 32, 16, 8):
        if t % sublane:
            continue  # bf16 needs 16-row sublane packing
        if m >= t and (pl.cdiv(m, t) * t - m) * 4 <= m:
            return t
    return _round_up(max(m, 1), sublane)


def _vmem_estimate_bytes(row_tile, h_in, h_out, act_itemsize, w_itemsize):
    # x / residual / out row tiles are double-buffered by the pipeline.
    tiles = 2 * row_tile * act_itemsize * (h_in + 2 * h_out)
    # weight + bias/gamma/beta have constant index maps (fetched once); budget
    # their worst-case double-buffered residency anyway.
    params = 2 * (w_itemsize * h_out * h_in + 3 * 4 * h_out)
    return tiles + params


def bert_output(hidden_states, input_tensor, weight, bias, gamma, beta,
                *, row_tile=None):
    """Fused BertOutput forward: LayerNorm(dropout(x @ W.T + b) + residual).

    hidden_states: [B, S, H_in]   (intermediate activations)
    input_tensor : [B, S, H_out]  (residual)
    weight       : [H_out, H_in]  (PyTorch nn.Linear layout, NOT pre-transposed)
    bias/gamma/beta: [H_out]
    Dropout is evaluated in inference mode (identity).
    """
    B, S, H_in = hidden_states.shape
    H_out = input_tensor.shape[-1]
    assert weight.shape == (H_out, H_in)

    M = B * S
    x2d = hidden_states.reshape(M, H_in)
    r2d = input_tensor.reshape(M, H_out)
    b2d = bias.reshape(1, H_out)
    g2d = gamma.reshape(1, H_out)
    be2d = beta.reshape(1, H_out)

    act_dtype = hidden_states.dtype
    sublane = 16 if act_dtype == jnp.bfloat16 else 8
    if row_tile is None:
        row_tile = _pick_row_tile(M, sublane)

    grid_m = pl.cdiv(M, row_tile)
    Mp = grid_m * row_tile
    if Mp != M:  # pad rows so large tiles work for arbitrary B*S; sliced off below
        pad = Mp - M
        x2d = jnp.pad(x2d, ((0, pad), (0, 0)))
        r2d = jnp.pad(r2d, ((0, pad), (0, 0)))

    # Only raise the scoped VMEM limit when the default would be exceeded
    # (keeps headroom on v7x's 64 MiB per TensorCore).
    est = _vmem_estimate_bytes(row_tile, H_in, H_out,
                               jnp.dtype(act_dtype).itemsize,
                               jnp.dtype(weight.dtype).itemsize)
    vmem_limit = None
    if est > 24 * 1024 * 1024:
        vmem_limit = int(min(est * 1.25 + (8 << 20), 112 << 20))

    out2d = pl.pallas_call(
        _bert_output_kernel,
        out_shape=jax.ShapeDtypeStruct((Mp, H_out), act_dtype),
        grid_spec=pltpu.PrefetchScalarGridSpec(
            num_scalar_prefetch=0,
            grid=(grid_m,),
            in_specs=[
                pl.BlockSpec((row_tile, H_in), lambda i: (i, 0)),    # x rows
                pl.BlockSpec((row_tile, H_out), lambda i: (i, 0)),   # residual rows
                pl.BlockSpec((H_out, H_in), lambda i: (0, 0)),       # weight (grid-invariant)
                pl.BlockSpec((1, H_out), lambda i: (0, 0)),          # bias
                pl.BlockSpec((1, H_out), lambda i: (0, 0)),          # gamma
                pl.BlockSpec((1, H_out), lambda i: (0, 0)),          # beta
            ],
            out_specs=pl.BlockSpec((row_tile, H_out), lambda i: (i, 0)),
        ),
        compiler_params=pltpu.CompilerParams(
            dimension_semantics=("parallel",),
            vmem_limit_bytes=vmem_limit),
    )(x2d, r2d, weight, b2d, g2d, be2d)

    return out2d[:M].reshape(B, S, H_out)


def _reference(hidden_states, input_tensor, weight, bias, gamma, beta):
    """Plain-JAX f32 reference matching the PyTorch module."""
    H_in = hidden_states.shape[-1]
    H_out = input_tensor.shape[-1]
    x = hidden_states.astype(jnp.float32).reshape(-1, H_in)
    y = x @ weight.astype(jnp.float32).T + bias.astype(jnp.float32)
    y = y + input_tensor.astype(jnp.float32).reshape(-1, H_out)
    u = y.mean(-1, keepdims=True)
    s = ((y - u) ** 2).mean(-1, keepdims=True)
    y = gamma.astype(jnp.float32) * ((y - u) / jnp.sqrt(s + LN_EPS)) \
        + beta.astype(jnp.float32)
    return y.reshape(input_tensor.shape)


if __name__ == "__main__":
    key = jax.random.PRNGKey(0)
    k1, k2, k3, k4 = jax.random.split(key, 4)

    # Small config consistent with BertOutput:
    # batch=2, seq=8, intermediate_size=64, hidden_size=32.
    B, S, H_in, H_out = 2, 8, 64, 32
    hidden_states = jax.random.normal(k1, (B, S, H_in), dtype=jnp.float32)
    input_tensor = jax.random.normal(k2, (B, S, H_out), dtype=jnp.float32)
    weight = jax.random.normal(k3, (H_out, H_in), dtype=jnp.float32) * 0.02
    bias = jax.random.normal(k4, (H_out,), dtype=jnp.float32) * 0.02
    gamma = jnp.ones((H_out,), dtype=jnp.float32)
    beta = jnp.zeros((H_out,), dtype=jnp.float32)

    # f32 path
    out = bert_output(hidden_states, input_tensor, weight, bias, gamma, beta)
    jax.block_until_ready(out)
    ref = _reference(hidden_states, input_tensor, weight, bias, gamma, beta)
    assert out.shape == ref.shape
    assert jnp.allclose(out, ref, atol=1e-5, rtol=1e-5), \
        float(jnp.max(jnp.abs(out - ref)))

    # bf16 path (native bf16 operands into the MXU, f32 accumulate/LN) with a
    # row count that is NOT a multiple of the tile, to exercise the padded path.
    Bb, Sb = 2, 7
    hs_bf = jax.random.normal(k1, (Bb, Sb, H_in), dtype=jnp.float32).astype(jnp.bfloat16)
    res_bf = jax.random.normal(k2, (Bb, Sb, H_out), dtype=jnp.float32).astype(jnp.bfloat16)
    out_bf = bert_output(hs_bf, res_bf,
                         weight.astype(jnp.bfloat16), bias.astype(jnp.bfloat16),
                         gamma.astype(jnp.bfloat16), beta.astype(jnp.bfloat16))
    jax.block_until_ready(out_bf)
    ref_bf = _reference(hs_bf, res_bf, weight, bias, gamma, beta)
    assert jnp.allclose(out_bf.astype(jnp.float32), ref_bf, atol=5e-2, rtol=5e-2), \
        float(jnp.max(jnp.abs(out_bf.astype(jnp.float32) - ref_bf)))

    print("KERNEL_OK")
</pallas_src>

<mosaic_0001>
module attributes {stable_mosaic.version = 11 : i64} {
  func.func @_bert_output_kernel(%arg0: i32, %arg1: memref<16x64xf32, #tpu.memory_space<vmem>>, %arg2: memref<16x32xf32, #tpu.memory_space<vmem>>, %arg3: memref<32x64xf32, #tpu.memory_space<vmem>>, %arg4: memref<1x32xf32, #tpu.memory_space<vmem>>, %arg5: memref<1x32xf32, #tpu.memory_space<vmem>>, %arg6: memref<1x32xf32, #tpu.memory_space<vmem>>, %arg7: memref<16x32xf32, #tpu.memory_space<vmem>>) attributes {dimension_semantics = [#tpu.dimension_semantics<parallel>], iteration_bounds = array<i64: 1>, scalar_prefetch = 0 : i64, scratch_operands = 0 : i64, tpu.core_type = #tpu.core_type<tc>, window_params = [{transform_indices = @transform_0, window_bounds = array<i64: 16, 64>}, {transform_indices = @transform_1, window_bounds = array<i64: 16, 32>}, {pipeline_mode = #tpu.pipeline_mode<synchronous>, transform_indices = @transform_2, window_bounds = array<i64: 32, 64>}, {pipeline_mode = #tpu.pipeline_mode<synchronous>, transform_indices = @transform_3, window_bounds = array<i64: 1, 32>}, {pipeline_mode = #tpu.pipeline_mode<synchronous>, transform_indices = @transform_4, window_bounds = array<i64: 1, 32>}, {pipeline_mode = #tpu.pipeline_mode<synchronous>, transform_indices = @transform_5, window_bounds = array<i64: 1, 32>}, {transform_indices = @transform_6, window_bounds = array<i64: 16, 32>}]} {
    %c0 = arith.constant 0 : index
    %c0_0 = arith.constant 0 : index
    %0 = vector.load %arg1[%c0, %c0_0] : memref<16x64xf32, #tpu.memory_space<vmem>>, vector<16x64xf32>
    %c0_1 = arith.constant 0 : index
    %c0_2 = arith.constant 0 : index
    %1 = vector.load %arg3[%c0_1, %c0_2] : memref<32x64xf32, #tpu.memory_space<vmem>>, vector<32x64xf32>
    %cst = arith.constant dense<0.000000e+00> : vector<16x32xf32>
    %2 = tpu.matmul %0, %1, %cst {dimension_numbers = #tpu.dot_dimension_numbers<[1], [1], [0], [0], [0, 0, 1, 0], [], []>} : vector<16x64xf32>, vector<32x64xf32>, vector<16x32xf32> -> vector<16x32xf32>
    %c0_3 = arith.constant 0 : index
    %c0_4 = arith.constant 0 : index
    %3 = vector.load %arg4[%c0_3, %c0_4] : memref<1x32xf32, #tpu.memory_space<vmem>>, vector<1x32xf32>
    %4 = vector.broadcast %3 : vector<1x32xf32> to vector<16x32xf32>
    %5 = arith.addf %2, %4 : vector<16x32xf32>
    %c0_5 = arith.constant 0 : index
    %c0_6 = arith.constant 0 : index
    %6 = vector.load %arg2[%c0_5, %c0_6] : memref<16x32xf32, #tpu.memory_space<vmem>>, vector<16x32xf32>
    %7 = arith.addf %5, %6 : vector<16x32xf32>
    %cst_7 = arith.constant dense<0.000000e+00> : vector<16xf32>
    %8 = vector.multi_reduction <add>, %7, %cst_7 [1] : vector<16x32xf32> to vector<16xf32>
    %9 = vector.shape_cast %8 : vector<16xf32> to vector<16x1xf32>
    %cst_8 = arith.constant 3.200000e+01 : f32
    %10 = vector.broadcast %cst_8 : f32 to vector<16x1xf32>
    %11 = arith.divf %9, %10 : vector<16x1xf32>
    %12 = vector.broadcast %11 : vector<16x1xf32> to vector<16x32xf32>
    %13 = arith.subf %7, %12 : vector<16x32xf32>
    %14 = arith.mulf %13, %13 : vector<16x32xf32>
    %cst_9 = arith.constant dense<0.000000e+00> : vector<16xf32>
    %15 = vector.multi_reduction <add>, %14, %cst_9 [1] : vector<16x32xf32> to vector<16xf32>
    %16 = vector.shape_cast %15 : vector<16xf32> to vector<16x1xf32>
    %cst_10 = arith.constant 3.200000e+01 : f32
    %17 = vector.broadcast %cst_10 : f32 to vector<16x1xf32>
    %18 = arith.divf %16, %17 : vector<16x1xf32>
    %cst_11 = arith.constant 9.99999996E-13 : f32
    %19 = vector.broadcast %cst_11 : f32 to vector<16x1xf32>
    %20 = arith.addf %18, %19 : vector<16x1xf32>
    %21 = math.rsqrt %20 : vector<16x1xf32>
    %22 = vector.broadcast %21 : vector<16x1xf32> to vector<16x32xf32>
    %23 = arith.mulf %13, %22 : vector<16x32xf32>
    %c0_12 = arith.constant 0 : index
    %c0_13 = arith.constant 0 : index
    %24 = vector.load %arg5[%c0_12, %c0_13] : memref<1x32xf32, #tpu.memory_space<vmem>>, vector<1x32xf32>
    %25 = vector.broadcast %24 : vector<1x32xf32> to vector<16x32xf32>
    %26 = arith.mulf %25, %23 : vector<16x32xf32>
    %c0_14 = arith.constant 0 : index
    %c0_15 = arith.constant 0 : index
    %27 = vector.load %arg6[%c0_14, %c0_15] : memref<1x32xf32, #tpu.memory_space<vmem>>, vector<1x32xf32>
    %28 = vector.broadcast %27 : vector<1x32xf32> to vector<16x32xf32>
    %29 = arith.addf %26, %28 : vector<16x32xf32>
    %c0_16 = arith.constant 0 : index
    %c0_17 = arith.constant 0 : index
    %30 = vector.load %arg7[%c0_16, %c0_17] : memref<16x32xf32, #tpu.memory_space<vmem>>, vector<16x32xf32>
    tpu.vector_store %arg7[%c0_16, %c0_17], %29 {strides = array<i32>} : memref<16x32xf32, #tpu.memory_space<vmem>>, vector<16x32xf32>,
    return
  }
  func.func @transform_0(%arg0: i32) -> (i32, i32) {
    %c0_i32 = arith.constant 0 : i32
    %c0_i32_0 = arith.constant 0 : i32
    return %arg0, %c0_i32 : i32, i32
  }
  func.func @transform_1(%arg0: i32) -> (i32, i32) {
    %c0_i32 = arith.constant 0 : i32
    %c0_i32_0 = arith.constant 0 : i32
    return %arg0, %c0_i32 : i32, i32
  }
  func.func @transform_2(%arg0: i32) -> (i32, i32) {
    %c0_i32 = arith.constant 0 : i32
    %c0_i32_0 = arith.constant 0 : i32
    %c0_i32_1 = arith.constant 0 : i32
    return %c0_i32, %c0_i32_0 : i32, i32
  }
  func.func @transform_3(%arg0: i32) -> (i32, i32) {
    %c0_i32 = arith.constant 0 : i32
    %c0_i32_0 = arith.constant 0 : i32
    %c0_i32_1 = arith.constant 0 : i32
    return %c0_i32, %c0_i32_0 : i32, i32
  }
  func.func @transform_4(%arg0: i32) -> (i32, i32) {
    %c0_i32 = arith.constant 0 : i32
    %c0_i32_0 = arith.constant 0 : i32
    %c0_i32_1 = arith.constant 0 : i32
    return %c0_i32, %c0_i32_0 : i32, i32
  }
  func.func @transform_5(%arg0: i32) -> (i32, i32) {
    %c0_i32 = arith.constant 0 : i32
    %c0_i32_0 = arith.constant 0 : i32
    %c0_i32_1 = arith.constant 0 : i32
    return %c0_i32, %c0_i32_0 : i32, i32
  }
  func.func @transform_6(%arg0: i32) -> (i32, i32) {
    %c0_i32 = arith.constant 0 : i32
    %c0_i32_0 = arith.constant 0 : i32
    return %arg0, %c0_i32 : i32, i32
  }
}

</mosaic_0001>

<bundles_post_ra>
// kernel: tpu_custom_call.1
= control target key start
LH: loop header
LB: loop body
LE: loop exit
PB: predicated region body
PF: predicated region fallthrough
CT: control target
= control target key end

     0   :  { %11 = vsyncpa [#allocation3], 0  ;;  %s432_s0 = inlined_call_operand.hbm [shape: f32[16,64], index: 0, kind: input, shape index: {}]   ;;  %s433_s1 = inlined_call_operand.hbm [shape: f32[16,32], index: 1, kind: input, shape index: {}]   ;;  %s434_s2 = inlined_call_operand.hbm [shape: f32[32,64], index: 2, kind: input, shape index: {}]   ;;  %s435_s3 = inlined_call_operand.vmem [shape: f32[1,32], index: 3, kind: input, shape index: {}]   ;;  %s436_s4 = inlined_call_operand.vmem [shape: f32[1,32], index: 4, kind: input, shape index: {}]   ;;  %s437_s5 = inlined_call_operand.vmem [shape: f32[1,32], index: 5, kind: input, shape index: {}]   ;;  %s438_s6 = inlined_call_operand.hbm [shape: f32[16,32], index: 6, kind: output, shape index: {}]  }
   0x1   :  { %12 = vsyncpa [#allocation6], 0 }
   0x2   :  { %13 = vsyncpa [#allocation4], 0  ;;  %s31_s23 = sshll.u32 %s433_s1, 4  ;;  %s341_s24 = smov [#allocation5]   ;;  %s32_s23 = int_to_ptr.hbm [resolvable:$true] %s31_s23 }
   0x3   :  { %s33_s25 = sshll.u32 %s341_s24, 4  ;;  %s18_s28 = sshll.u32 %s432_s0, 4  ;;  %s34_s25 = int_to_ptr.vmem [resolvable:$true] %s33_s25  ;;  %s19_s28 = int_to_ptr.hbm [resolvable:$true] %s18_s28 }
   0x4   :  { %s342_s29 = smov 128   ;;  %s343_s30 = smov 8  }
   0x5   :  { %39 = dma.hbm_to_vmem [thread:$0]  %s32_s23, 256, %s34_s25, [#allocation6], %s342_s29, %s342_s29, %s343_s30  }
   0x6   :  { %s344_s7 = smov [#allocation2]   ;;  %s44_s1 = sshll.u32 %s434_s2, 4  ;;  %s45_s1 = int_to_ptr.hbm [resolvable:$true] %s44_s1 }
   0x7   :  { %s20_s8 = sshll.u32 %s344_s7, 4  ;;  %s345_s0 = smov [#allocation7]   ;;  %s21_s8 = int_to_ptr.vmem [resolvable:$true] %s20_s8 }
   0x8   :  { %26 = dma.hbm_to_vmem [thread:$0]  %s19_s28, 256, %s21_s8, [#allocation3], %s342_s29, %s342_s29, %s343_s30  }
   0x9   :  { %s46_s11 = sshll.u32 %s345_s0, 4  ;;  %s47_s11 = int_to_ptr.vmem [resolvable:$true] %s46_s11 }
   0xa   :  { %52 = dma.hbm_to_vmem [thread:$0]  %s45_s1, 512, %s47_s11, [#allocation6], %s342_s29, %s342_s29, %s343_s30  }
   0xb   :  { %335 = dma.done.wait [#allocation3], 256  }
   0xc   :  { %336 = vsyncadd [#allocation3], 4294967040 }
   0xd   :  { %337 = dma.done.wait [#allocation6], 768  }
   0xe   :  { %338 = vsyncadd [#allocation6], 4294966528  ;;  %vm81_vm0 = vcmask 523264   ;;  %v76_v0 = vld [vmem:[#allocation7 + $0x18] sm:$0xff]  ;;  %v75_v1 = vld [vmem:[#allocation7 + $0x10] sm:$0xff]  ;;  %vm127_vm1 = vcmask 261120  }
   0xf   :  { %213 = vmatpush.xpose.msk.msra.mxu0 %vm81_vm0, %v76_v0  ;;  %219 = vmatpush.xpose.msk.msra.mxu1 %vm81_vm0, %v76_v0  ;;  %v74_v2 = vld [vmem:[#allocation7 + $0x8] sm:$0xff]  ;;  %v73_v3 = vld [vmem:[#allocation7] sm:$0xff]  ;;  %v123_v8 = vld [vmem:[#allocation5] sm:$0xff]  ;;  %v346_v17 = vmov 32.0   ;;  %s199_s19 = sshll.u32 %s438_s6, 4  ;;  %s200_s19 = int_to_ptr.hbm [resolvable:$true] %s199_s19 }
  0x10   :  { %v71_v4 = vld [vmem:[#allocation2] sm:$0xff]  ;;  %v72_v5 = vld [vmem:[#allocation2 + $0x8] sm:$0xff]  ;;  %v124_v13 = vld [vmem:[#allocation5 + $0x8] sm:$0xff]  ;;  %233 = vrcp.f32 %v346_v17 }
  0x11   :  { %v230_v6 = vld [vmem:[%s435_s3] ss:$0 sm:$0xff] }
  0x12   :  { %v231_v48 = vld [vmem:[%s436_s4] ss:$0 sm:$0xff]  ;;  %s347_s4 = smov [#allocation8]  }
  0x13   :  { %214 = vmatpush.xpose.msk.msra.mxu0 %vm81_vm0, %v75_v1  ;;  %220 = vmatpush.xpose.msk.msra.mxu1 %vm81_vm0, %v75_v1  ;;  %v232_v52 = vld [vmem:[%s437_s5] ss:$0 sm:$0xff]  ;;  %s197_s16 = sshll.u32 %s347_s4, 4  ;;  %s198_s16 = int_to_ptr.vmem [resolvable:$true] %s197_s16 }
  0x16   :  { %v234_v18 = vpop.eup %233 }
  0x17   :  { %215 = vmatpush.xpose.msk.msra.mxu0 %vm81_vm0, %v74_v2  ;;  %221 = vmatpush.xpose.msk.msra.mxu1 %vm81_vm0, %v74_v2  ;;  %v135_v19 = vmul.f32 32.0, %v234_v18  ;;  %vm139_vm2 = vweird.f32 %v234_v18 }
  0x19   :  { %v136_v20 = vsub.f32 1.0, %v135_v19 }
  0x1b   :  { %216 = vmatpush.xpose.msk.msra.mxu0 %vm81_vm0, %v73_v3  ;;  %222 = vmatpush.xpose.msk.msra.mxu1 %vm81_vm0, %v73_v3  ;;  %v137_v21 = vmul.f32 %v234_v18, %v136_v20 }
  0x1d   :  { %v138_v22 = vadd.f32 %v234_v18, %v137_v21 }
  0x1e   :  { %217 = vmatmul.msk.f32.vlgmr.msra.gmra.mxu0 %vm81_vm0, %v71_v4  ;;  %218 = vmatmul.msk.f32.vlgmr.msra.gmra.mxu1 %vm81_vm0, %v72_v5 }
  0x1f   :  { %v140_v23 = vsel %vm139_vm2, %v234_v18, %v138_v22 }
  0x9b   :  { %v117_v7 = vpop.f32.mrf.mxu0  ;;  %v120_v9 = vpop.f32.mrf.mxu1 }
  0x9c   :  { %v118_v10 = vadd.f32 %v230_v6, %v117_v7  ;;  %v121_v12 = vadd.f32 %v230_v6, %v120_v9 }
  0x9e   :  { %v125_v11 = vadd.f32 %v123_v8, %v118_v10  ;;  %v126_v15 = vadd.f32 %v124_v13, %v121_v12 }
  0xa0   :  { %v128_v14 = vsel %vm127_vm1, %v125_v11, 0.0  ;;  %v131_v16 = vsel %vm127_vm1, %v126_v15, 0.0 }
  0xa1   :  { %129 = vadd.xlane.f32.xlu0 %v128_v14 }
  0xa9   :  { %132 = vadd.xlane.f32.xlu0 %v131_v16 }
 0x114   :  { %v130_v24 = vpop.xlane.xlu0 %129 }
 0x115   :  { %v141_v25 = vmul.f32 %v140_v23, %v130_v24 }
 0x117   :  { %v143_v26 = vsub.f32 %v125_v11, %v141_v25 }
 0x119   :  { %v145_v27 = vmul.f32 %v143_v26, %v143_v26 }
 0x11b   :  { %v147_v28 = vsel %vm127_vm1, %v145_v27, 0.0 }
 0x11c   :  { %148 = vadd.xlane.f32.xlu1 %v147_v28  ;;  %v133_v29 = vpop.xlane.xlu0 %132 }
 0x11d   :  { %v142_v30 = vmul.f32 %v140_v23, %v133_v29 }
 0x11f   :  { %v144_v31 = vsub.f32 %v126_v15, %v142_v30 }
 0x121   :  { %v146_v32 = vmul.f32 %v144_v31, %v144_v31 }
 0x123   :  { %v150_v33 = vsel %vm127_vm1, %v146_v32, 0.0 }
 0x124   :  { %151 = vadd.xlane.f32.xlu1 %v150_v33 }
 0x18f   :  { %v149_v34 = vpop.xlane.xlu1 %148 }
 0x190   :  { %v153_v35 = vmul.f32 %v149_v34, %v140_v23 }
 0x192   :  { %v155_v36 = vadd.f32 1e-12, %v153_v35 }
 0x194   :  { %235 = vrsqrt.f32 %v155_v36  ;;  %vm163_vm4 = vweird.f32 %v155_v36 }
 0x197   :  { %v152_v37 = vpop.xlane.xlu1 %151 }
 0x198   :  { %v154_v38 = vmul.f32 %v152_v37, %v140_v23 }
 0x19a   :  { %v236_v39 = vpop.eup %235  ;;  %v156_v40 = vadd.f32 1e-12, %v154_v38 }
 0x19b   :  { %v158_v41 = vmul.f32 %v236_v39, %v155_v36  ;;  %vm164_vm3 = vweird.f32 %v236_v39 }
 0x19c   :  { %237 = vrsqrt.f32 %v156_v40  ;;  %vm165_vm5 = vmor %vm163_vm4, %vm164_vm3  ;;  %vm173_vm7 = vweird.f32 %v156_v40 }
 0x19d   :  { %v159_v42 = vmul.f32 %v236_v39, %v158_v41 }
 0x19f   :  { %v160_v43 = vmul.f32 0.5, %v159_v42 }
 0x1a1   :  { %v161_v44 = vsub.f32 1.5, %v160_v43 }
 0x1a2   :  { %v238_v45 = vpop.eup %237 }
 0x1a3   :  { %v162_v46 = vmul.f32 %v236_v39, %v161_v44  ;;  %v168_v47 = vmul.f32 %v238_v45, %v156_v40  ;;  %vm174_vm6 = vweird.f32 %v238_v45 }
 0x1a4   :  { %vm175_vm8 = vmor %vm173_vm7, %vm174_vm6 }
 0x1a5   :  { %v166_v49 = vsel %vm165_vm5, %v236_v39, %v162_v46  ;;  %v169_v50 = vmul.f32 %v238_v45, %v168_v47 }
 0x1a6   :  { %v177_v51 = vmul.f32 %v166_v49, %v143_v26 }
 0x1a7   :  { %v170_v53 = vmul.f32 0.5, %v169_v50 }
 0x1a8   :  { %v183_v54 = vmul.f32 %v231_v48, %v177_v51 }
 0x1a9   :  { %v171_v55 = vsub.f32 1.5, %v170_v53 }
 0x1aa   :  { %v189_v56 = vadd.f32 %v232_v52, %v183_v54 }
 0x1ab   :  { %v172_v57 = vmul.f32 %v238_v45, %v171_v55 }
 0x1ac   :  { %191 = vst.msk [vmem:[#allocation8] sm:$0xff] %vm127_vm1, %v189_v56 }
 0x1ad   :  { %v176_v58 = vsel %vm175_vm8, %v238_v45, %v172_v57 }
 0x1ae   :  { %v178_v59 = vmul.f32 %v176_v58, %v144_v31 }
 0x1b0   :  { %v184_v60 = vmul.f32 %v231_v48, %v178_v59 }
 0x1b2   :  { %v190_v61 = vadd.f32 %v232_v52, %v184_v60 }
 0x1b4   :  { %192 = vst.msk [vmem:[#allocation8 + $0x8] sm:$0xff] %vm127_vm1, %v190_v61 }
 0x1b5   :  { %205 = dma.vmem_to_hbm [thread:$0]  %s198_s16, 256, %s200_s19, [#allocation4], %s342_s29, %s342_s29, %s343_s30  }
 0x1b6   :  { %339 = dma.done.wait [#allocation4], 256  }
 0x1b7   :  { %340 = vsyncadd [#allocation4], 4294967040 }
 0x1b8   :  { %210 = vsyncpa [#allocation3], 1 }
 0x1b9   :  { %211 = vsyncpa [#allocation6], 1 }
 0x1ba   :  { %212 = vsyncpa [#allocation4], 1 }

</bundles_post_ra>
